<compile_context>
chip_gen: v7x
topology: tpu7x:2x2x1
jax: 0.10.0
libtpu: 0.0.40
codegen_flags: <defaults>
</compile_context>

<pallas_src>
import jax
import jax.numpy as jnp
from jax import lax
from jax.experimental import pallas as pl
from jax.experimental.pallas import tpu as pltpu

NEG_SLOPE = 0.005
BN_EPS = 1e-5


# ----------------------------- kernel helpers ------------------------------ #
def _conv_bn_block(xp_ref, bw_ref, bias_wc, gamma, beta, selr, selb, n, h, wc):
    """3x3 'same' conv (3 banded MXU matmuls over row taps) -> +bias ->
    LeakyReLU(0.005) -> training-mode BatchNorm (global batch stats).

    xp_ref : (N, H+2, W*C) bf16 VMEM ref; rows 0 and H+1 are zero
    bw_ref : (3, W*C, W*C) bf16 banded conv weights (one matmul per row tap dy)
    bias_wc: (1, W*C) f32  conv bias tiled over w
    gamma, beta: (1, C) f32  BN affine parameters
    selr   : (W*C, C) f32  folded-lane -> per-channel reduction matrix
    selb   : (C, W*C) f32  per-channel -> folded-lane broadcast matrix
    returns (N*H, W*C) f32
    """
    c = gamma.shape[1]
    inv_count = 1.0 / float(n * h * (wc // c))

    # 3 row-tap matmuls with f32 accumulation.  Each tap is read directly from
    # the (already bf16) ref -- no big live padded value, no per-tap packing.
    acc = None
    for dy in range(3):
        tap = xp_ref[:, dy:dy + h, :].reshape(n * h, wc)        # bf16
        part = lax.dot_general(tap, bw_ref[dy],
                               (((1,), (0,)), ((), ())),
                               preferred_element_type=jnp.float32)
        acc = part if acc is None else acc + part
    y = acc + bias_wc                                           # conv bias
    y = jnp.where(y >= 0, y, NEG_SLOPE * y)                     # LeakyReLU(0.005)

    # Single-pass BN statistics: sublane-reduce sum and sum-of-squares, then a
    # tiny selection matmul folds the W-periodic lanes down to per-channel.
    s1 = jnp.sum(y, axis=0, keepdims=True)                      # (1, W*C)
    s2 = jnp.sum(y * y, axis=0, keepdims=True)                  # (1, W*C)
    stats = lax.dot_general(jnp.concatenate([s1, s2], axis=0), selr,
                            (((1,), (0,)), ((), ())),
                            preferred_element_type=jnp.float32)  # (2, C)
    mean = stats[0:1] * inv_count                               # (1, C)
    var = stats[1:2] * inv_count - mean * mean                  # biased variance
    scale = gamma * lax.rsqrt(var + BN_EPS)                     # (1, C)
    shift = beta - mean * scale                                 # (1, C)
    ss = lax.dot_general(jnp.concatenate([scale, shift], axis=0), selb,
                         (((1,), (0,)), ((), ())),
                         preferred_element_type=jnp.float32)    # (2, W*C)
    return y * ss[0:1] + ss[1:2]


# --------------------------------- kernel ----------------------------------- #
def res_block_kernel(x_ref, bw1_ref, b1_ref, g1_ref, be1_ref,
                     bw2_ref, b2_ref, g2_ref, be2_ref, selr_ref, selb_ref,
                     o_ref, xp_ref):
    """Fused ResBlock: (conv3x3 -> LeakyReLU -> BN) x2 + residual add."""
    n, h, wc = x_ref.shape

    # Zero only the two H-pad rows (reused by both conv blocks).
    zrow = jnp.zeros((n, 1, wc), xp_ref.dtype)
    xp_ref[:, 0:1, :] = zrow
    xp_ref[:, h + 1:h + 2, :] = zrow

    selr = selr_ref[...]
    selb = selb_ref[...]

    # conv block 1 (interior written once as bf16)
    xp_ref[:, 1:h + 1, :] = x_ref[...].astype(xp_ref.dtype)
    y = _conv_bn_block(xp_ref, bw1_ref, b1_ref[...], g1_ref[...], be1_ref[...],
                       selr, selb, n, h, wc)                    # (N*H, W*C) f32

    # conv block 2: intermediate never leaves VMEM
    xp_ref[:, 1:h + 1, :] = y.reshape(n, h, wc).astype(xp_ref.dtype)
    y = _conv_bn_block(xp_ref, bw2_ref, b2_ref[...], g2_ref[...], be2_ref[...],
                       selr, selb, n, h, wc)                    # (N*H, W*C) f32

    # residual add, lane-dense store
    o_ref[...] = (y.reshape(n, h, wc) + x_ref[...]).astype(o_ref.dtype)


# -------------------------------- wrapper ------------------------------------ #
def _band_weights(w, width):
    """(3, 3, C_in, C_out) HWIO conv weight -> (3, W*C, W*C) banded bf16 mats.

    bw[dy][(w+dx-1)*C + ci, w*C + co] = w[dy, dx, ci, co]; out-of-range
    (w+dx-1) taps are simply dropped (they multiply the zero 'same' padding).
    """
    mats = []
    for dy in range(3):
        m = sum(jnp.kron(jnp.eye(width, k=1 - dx, dtype=w.dtype), w[dy, dx])
                for dx in range(3))
        mats.append(m)
    return jnp.stack(mats).astype(jnp.bfloat16)


def res_block(x_nhwc, params):
    """ResBlock forward.  x_nhwc: (N, H, W, C) float32."""
    N, H, W, C = x_nhwc.shape
    w1, b1, g1, be1, w2, b2, g2, be2 = params
    WC = W * C

    # Layout plumbing (wrapper side, once): fold channels into the lane axis.
    x = x_nhwc.reshape(N, H, WC)                      # free contiguous reshape
    bw1 = _band_weights(w1, W)
    bw2 = _band_weights(w2, W)
    b1_wc = jnp.tile(b1.reshape(1, C), (1, W)).astype(jnp.float32)
    b2_wc = jnp.tile(b2.reshape(1, C), (1, W)).astype(jnp.float32)
    eyec = jnp.eye(C, dtype=jnp.float32)
    selr = jnp.tile(eyec, (W, 1))                     # (W*C, C) reduce matrix
    selb = jnp.tile(eyec, (1, W))                     # (C, W*C) broadcast matrix

    vmem = pl.BlockSpec(memory_space=pltpu.MemorySpace.VMEM)

    # Right-sized VMEM estimate (gridless full-array specs: no double buffering)
    # with a generation-aware cap (v7x only has 64 MiB physical per core).
    f32b, bf16b = 4, 2
    est_bytes = (
        2 * N * H * WC * f32b                 # input + output
        + N * (H + 2) * WC * bf16b            # padded-activation scratch (bf16)
        + 2 * 3 * WC * WC * bf16b             # banded conv weights
        + (2 * WC + 8 * C + 2 * WC * C) * f32b  # biases / BN params / sel mats
        + 4 * N * H * WC * f32b               # in-flight f32 intermediates
    )
    try:
        cap = int(pltpu.get_tpu_info().vmem_capacity_bytes)
    except Exception:
        cap = 64 << 20
    vmem_limit = int(min(max(int(1.5 * est_bytes), 4 << 20), (3 * cap) // 4))

    out = pl.pallas_call(
        res_block_kernel,
        out_shape=jax.ShapeDtypeStruct((N, H, WC), x_nhwc.dtype),
        in_specs=[vmem] * 11,
        out_specs=vmem,
        scratch_shapes=[
            pltpu.VMEM((N, H + 2, WC), jnp.bfloat16),   # padded activation
        ],
        compiler_params=pltpu.CompilerParams(vmem_limit_bytes=vmem_limit),
    )(x, bw1, b1_wc, g1, be1, bw2, b2_wc, g2, be2, selr, selb)
    return out.reshape(N, H, W, C)


# --------------------------- pure-JAX reference ----------------------------- #
def res_block_reference(x_nhwc, params):
    w1, b1, g1, be1, w2, b2, g2, be2 = params

    def block(h, w, b, g, be):
        y = lax.conv_general_dilated(
            h, w, window_strides=(1, 1), padding="SAME",
            dimension_numbers=("NHWC", "HWIO", "NHWC"),
            precision=lax.Precision.HIGHEST)
        y = y + b.reshape(1, 1, 1, -1)
        y = jnp.where(y >= 0, y, NEG_SLOPE * y)
        mean = jnp.mean(y, axis=(0, 1, 2), keepdims=True)
        var = jnp.mean(jnp.square(y - mean), axis=(0, 1, 2), keepdims=True)
        return (y - mean) * lax.rsqrt(var + BN_EPS) * g.reshape(1, 1, 1, -1) \
               + be.reshape(1, 1, 1, -1)

    y = block(x_nhwc, w1, b1, g1, be1)
    y = block(y, w2, b2, g2, be2)
    return y + x_nhwc


# ---------------------------------- main ------------------------------------ #
if __name__ == "__main__":
    key = jax.random.PRNGKey(0)
    N, C, H, W = 2, 4, 16, 16  # small shapes consistent with ResBlock(in_c=4)

    ks = jax.random.split(key, 9)
    # PyTorch-convention NCHW input
    x_nchw = jax.random.normal(ks[0], (N, C, H, W), jnp.float32)

    # Deterministic synthetic parameters (shapes from double_conv(in_c, in_c)).
    # Conv weights stored as (kh, kw, C_in, C_out) == torch (C_out, C_in, kh, kw).T
    w1 = 0.1 * jax.random.normal(ks[1], (3, 3, C, C), jnp.float32)
    b1 = 0.1 * jax.random.normal(ks[2], (1, C), jnp.float32)
    g1 = 1.0 + 0.1 * jax.random.normal(ks[3], (1, C), jnp.float32)
    be1 = 0.1 * jax.random.normal(ks[4], (1, C), jnp.float32)
    w2 = 0.1 * jax.random.normal(ks[5], (3, 3, C, C), jnp.float32)
    b2 = 0.1 * jax.random.normal(ks[6], (1, C), jnp.float32)
    g2 = 1.0 + 0.1 * jax.random.normal(ks[7], (1, C), jnp.float32)
    be2 = 0.1 * jax.random.normal(ks[8], (1, C), jnp.float32)
    params = (w1, b1, g1, be1, w2, b2, g2, be2)

    # NCHW -> NHWC for the TPU kernel (layout glue).
    x = jnp.transpose(x_nchw, (0, 2, 3, 1))

    out = jax.jit(res_block)(x, params)
    out = jax.block_until_ready(out)

    ref = res_block_reference(x, params)
    assert out.shape == (N, H, W, C)
    # Tolerance reflects bf16 MXU inputs / bf16 intermediate activation (f32
    # accumulation) vs. the f32 HIGHEST-precision reference (~1e-2 observed).
    assert jnp.allclose(out, ref, atol=5e-2, rtol=5e-2), \
        f"max abs err = {jnp.max(jnp.abs(out - ref))}"

    print("KERNEL_OK")
</pallas_src>

<mosaic_0001>
module attributes {stable_mosaic.version = 11 : i64} {
  func.func @res_block_kernel(%arg0: memref<2x16x64xf32, #tpu.memory_space<vmem>>, %arg1: memref<3x64x64xbf16, #tpu.memory_space<vmem>>, %arg2: memref<1x64xf32, #tpu.memory_space<vmem>>, %arg3: memref<1x4xf32, #tpu.memory_space<vmem>>, %arg4: memref<1x4xf32, #tpu.memory_space<vmem>>, %arg5: memref<3x64x64xbf16, #tpu.memory_space<vmem>>, %arg6: memref<1x64xf32, #tpu.memory_space<vmem>>, %arg7: memref<1x4xf32, #tpu.memory_space<vmem>>, %arg8: memref<1x4xf32, #tpu.memory_space<vmem>>, %arg9: memref<64x4xf32, #tpu.memory_space<vmem>>, %arg10: memref<4x64xf32, #tpu.memory_space<vmem>>, %arg11: memref<2x16x64xf32, #tpu.memory_space<vmem>>, %arg12: memref<2x18x64xbf16, #tpu.memory_space<vmem>>) attributes {dimension_semantics = [], scalar_prefetch = 0 : i64, scratch_operands = 1 : i64, tpu.core_type = #tpu.core_type<tc>} {
    %cst = arith.constant 0.000000e+00 : bf16
    %0 = vector.broadcast %cst : bf16 to vector<2x1x64xbf16>
    %c0 = arith.constant 0 : index
    %c0_0 = arith.constant 0 : index
    %c0_1 = arith.constant 0 : index
    %1 = vector.load %arg12[%c0, %c0_0, %c0_1] : memref<2x18x64xbf16, #tpu.memory_space<vmem>>, vector<2x1x64xbf16>
    tpu.vector_store %arg12[%c0, %c0_0, %c0_1], %0 {strides = array<i32>} : memref<2x18x64xbf16, #tpu.memory_space<vmem>>, vector<2x1x64xbf16>,
    %c0_2 = arith.constant 0 : index
    %c17 = arith.constant 17 : index
    %c0_3 = arith.constant 0 : index
    %2 = vector.load %arg12[%c0_2, %c17, %c0_3] : memref<2x18x64xbf16, #tpu.memory_space<vmem>>, vector<2x1x64xbf16>
    tpu.vector_store %arg12[%c0_2, %c17, %c0_3], %0 {strides = array<i32>} : memref<2x18x64xbf16, #tpu.memory_space<vmem>>, vector<2x1x64xbf16>,
    %c0_4 = arith.constant 0 : index
    %c0_5 = arith.constant 0 : index
    %3 = vector.load %arg9[%c0_4, %c0_5] : memref<64x4xf32, #tpu.memory_space<vmem>>, vector<64x4xf32>
    %c0_6 = arith.constant 0 : index
    %c0_7 = arith.constant 0 : index
    %4 = vector.load %arg10[%c0_6, %c0_7] : memref<4x64xf32, #tpu.memory_space<vmem>>, vector<4x64xf32>
    %c0_8 = arith.constant 0 : index
    %c0_9 = arith.constant 0 : index
    %c0_10 = arith.constant 0 : index
    %5 = vector.load %arg0[%c0_8, %c0_9, %c0_10] : memref<2x16x64xf32, #tpu.memory_space<vmem>>, vector<2x16x64xf32>
    %6 = arith.truncf %5 : vector<2x16x64xf32> to vector<2x16x64xbf16>
    %c0_11 = arith.constant 0 : index
    %c1 = arith.constant 1 : index
    %c0_12 = arith.constant 0 : index
    %7 = vector.load %arg12[%c0_11, %c1, %c0_12] : memref<2x18x64xbf16, #tpu.memory_space<vmem>>, vector<2x16x64xbf16>
    tpu.vector_store %arg12[%c0_11, %c1, %c0_12], %6 {strides = array<i32>} : memref<2x18x64xbf16, #tpu.memory_space<vmem>>, vector<2x16x64xbf16>,
    %c0_13 = arith.constant 0 : index
    %c0_14 = arith.constant 0 : index
    %8 = vector.load %arg2[%c0_13, %c0_14] : memref<1x64xf32, #tpu.memory_space<vmem>>, vector<1x64xf32>
    %c0_15 = arith.constant 0 : index
    %c0_16 = arith.constant 0 : index
    %9 = vector.load %arg3[%c0_15, %c0_16] : memref<1x4xf32, #tpu.memory_space<vmem>>, vector<1x4xf32>
    %c0_17 = arith.constant 0 : index
    %c0_18 = arith.constant 0 : index
    %10 = vector.load %arg4[%c0_17, %c0_18] : memref<1x4xf32, #tpu.memory_space<vmem>>, vector<1x4xf32>
    %c0_19 = arith.constant 0 : index
    %c0_20 = arith.constant 0 : index
    %c0_21 = arith.constant 0 : index
    %11 = vector.load %arg12[%c0_19, %c0_20, %c0_21] : memref<2x18x64xbf16, #tpu.memory_space<vmem>>, vector<2x16x64xbf16>
    %12 = vector.shape_cast %11 : vector<2x16x64xbf16> to vector<32x64xbf16>
    %c0_22 = arith.constant 0 : index
    %c0_23 = arith.constant 0 : index
    %c0_24 = arith.constant 0 : index
    %13 = vector.load %arg1[%c0_22, %c0_23, %c0_24] : memref<3x64x64xbf16, #tpu.memory_space<vmem>>, vector<1x64x64xbf16>
    %14 = vector.shape_cast %13 : vector<1x64x64xbf16> to vector<64x64xbf16>
    %cst_25 = arith.constant dense<0.000000e+00> : vector<32x64xf32>
    %15 = tpu.matmul %12, %14, %cst_25 {dimension_numbers = #tpu.dot_dimension_numbers<[1], [0], [0], [1], [0, 0, 1, 1], [], []>} : vector<32x64xbf16>, vector<64x64xbf16>, vector<32x64xf32> -> vector<32x64xf32>
    %c0_26 = arith.constant 0 : index
    %c1_27 = arith.constant 1 : index
    %c0_28 = arith.constant 0 : index
    %16 = vector.load %arg12[%c0_26, %c1_27, %c0_28] : memref<2x18x64xbf16, #tpu.memory_space<vmem>>, vector<2x16x64xbf16>
    %17 = vector.shape_cast %16 : vector<2x16x64xbf16> to vector<32x64xbf16>
    %c1_29 = arith.constant 1 : index
    %c0_30 = arith.constant 0 : index
    %c0_31 = arith.constant 0 : index
    %18 = vector.load %arg1[%c1_29, %c0_30, %c0_31] : memref<3x64x64xbf16, #tpu.memory_space<vmem>>, vector<1x64x64xbf16>
    %19 = vector.shape_cast %18 : vector<1x64x64xbf16> to vector<64x64xbf16>
    %cst_32 = arith.constant dense<0.000000e+00> : vector<32x64xf32>
    %20 = tpu.matmul %17, %19, %cst_32 {dimension_numbers = #tpu.dot_dimension_numbers<[1], [0], [0], [1], [0, 0, 1, 1], [], []>} : vector<32x64xbf16>, vector<64x64xbf16>, vector<32x64xf32> -> vector<32x64xf32>
    %21 = arith.addf %15, %20 : vector<32x64xf32>
    %c0_33 = arith.constant 0 : index
    %c2 = arith.constant 2 : index
    %c0_34 = arith.constant 0 : index
    %22 = vector.load %arg12[%c0_33, %c2, %c0_34] : memref<2x18x64xbf16, #tpu.memory_space<vmem>>, vector<2x16x64xbf16>
    %23 = vector.shape_cast %22 : vector<2x16x64xbf16> to vector<32x64xbf16>
    %c2_35 = arith.constant 2 : index
    %c0_36 = arith.constant 0 : index
    %c0_37 = arith.constant 0 : index
    %24 = vector.load %arg1[%c2_35, %c0_36, %c0_37] : memref<3x64x64xbf16, #tpu.memory_space<vmem>>, vector<1x64x64xbf16>
    %25 = vector.shape_cast %24 : vector<1x64x64xbf16> to vector<64x64xbf16>
    %cst_38 = arith.constant dense<0.000000e+00> : vector<32x64xf32>
    %26 = tpu.matmul %23, %25, %cst_38 {dimension_numbers = #tpu.dot_dimension_numbers<[1], [0], [0], [1], [0, 0, 1, 1], [], []>} : vector<32x64xbf16>, vector<64x64xbf16>, vector<32x64xf32> -> vector<32x64xf32>
    %27 = arith.addf %21, %26 : vector<32x64xf32>
    %28 = vector.broadcast %8 : vector<1x64xf32> to vector<32x64xf32>
    %29 = arith.addf %27, %28 : vector<32x64xf32>
    %cst_39 = arith.constant 0.000000e+00 : f32
    %30 = vector.broadcast %cst_39 : f32 to vector<32x64xf32>
    %31 = arith.cmpf oge, %29, %30 : vector<32x64xf32>
    %cst_40 = arith.constant 5.000000e-03 : f32
    %32 = vector.broadcast %cst_40 : f32 to vector<32x64xf32>
    %33 = arith.mulf %32, %29 : vector<32x64xf32>
    %34 = arith.select %31, %29, %33 : vector<32x64xi1>, vector<32x64xf32>
    %cst_41 = arith.constant dense<0.000000e+00> : vector<64xf32>
    %35 = vector.multi_reduction <add>, %34, %cst_41 [0] : vector<32x64xf32> to vector<64xf32>
    %36 = vector.shape_cast %35 : vector<64xf32> to vector<1x64xf32>
    %37 = arith.mulf %34, %34 : vector<32x64xf32>
    %cst_42 = arith.constant dense<0.000000e+00> : vector<64xf32>
    %38 = vector.multi_reduction <add>, %37, %cst_42 [0] : vector<32x64xf32> to vector<64xf32>
    %39 = vector.shape_cast %38 : vector<64xf32> to vector<1x64xf32>
    %40 = tpu.concatenate %36, %39 in 0 : vector<1x64xf32>, vector<1x64xf32> -> vector<2x64xf32>
    %cst_43 = arith.constant dense<0.000000e+00> : vector<2x4xf32>
    %41 = tpu.matmul %40, %3, %cst_43 {dimension_numbers = #tpu.dot_dimension_numbers<[1], [0], [0], [1], [0, 0, 1, 1], [], []>} : vector<2x64xf32>, vector<64x4xf32>, vector<2x4xf32> -> vector<2x4xf32>
    %42 = vector.extract_strided_slice %41 {offsets = [0, 0], sizes = [1, 4], strides = [1, 1]} : vector<2x4xf32> to vector<1x4xf32>
    %cst_44 = arith.constant 0.001953125 : f32
    %43 = vector.broadcast %cst_44 : f32 to vector<1x4xf32>
    %44 = arith.mulf %42, %43 : vector<1x4xf32>
    %45 = vector.extract_strided_slice %41 {offsets = [1, 0], sizes = [1, 4], strides = [1, 1]} : vector<2x4xf32> to vector<1x4xf32>
    %cst_45 = arith.constant 0.001953125 : f32
    %46 = vector.broadcast %cst_45 : f32 to vector<1x4xf32>
    %47 = arith.mulf %45, %46 : vector<1x4xf32>
    %48 = arith.mulf %44, %44 : vector<1x4xf32>
    %49 = arith.subf %47, %48 : vector<1x4xf32>
    %cst_46 = arith.constant 9.99999974E-6 : f32
    %50 = vector.broadcast %cst_46 : f32 to vector<1x4xf32>
    %51 = arith.addf %49, %50 : vector<1x4xf32>
    %52 = math.rsqrt %51 : vector<1x4xf32>
    %53 = arith.mulf %9, %52 : vector<1x4xf32>
    %54 = arith.mulf %44, %53 : vector<1x4xf32>
    %55 = arith.subf %10, %54 : vector<1x4xf32>
    %56 = tpu.concatenate %53, %55 in 0 : vector<1x4xf32>, vector<1x4xf32> -> vector<2x4xf32>
    %cst_47 = arith.constant dense<0.000000e+00> : vector<2x64xf32>
    %57 = tpu.matmul %56, %4, %cst_47 {dimension_numbers = #tpu.dot_dimension_numbers<[1], [0], [0], [1], [0, 0, 1, 1], [], []>} : vector<2x4xf32>, vector<4x64xf32>, vector<2x64xf32> -> vector<2x64xf32>
    %58 = vector.extract_strided_slice %57 {offsets = [0, 0], sizes = [1, 64], strides = [1, 1]} : vector<2x64xf32> to vector<1x64xf32>
    %59 = vector.broadcast %58 : vector<1x64xf32> to vector<32x64xf32>
    %60 = arith.mulf %34, %59 : vector<32x64xf32>
    %61 = vector.extract_strided_slice %57 {offsets = [1, 0], sizes = [1, 64], strides = [1, 1]} : vector<2x64xf32> to vector<1x64xf32>
    %62 = vector.broadcast %61 : vector<1x64xf32> to vector<32x64xf32>
    %63 = arith.addf %60, %62 : vector<32x64xf32>
    %64 = vector.shape_cast %63 : vector<32x64xf32> to vector<2x16x64xf32>
    %65 = arith.truncf %64 : vector<2x16x64xf32> to vector<2x16x64xbf16>
    %c0_48 = arith.constant 0 : index
    %c1_49 = arith.constant 1 : index
    %c0_50 = arith.constant 0 : index
    %66 = vector.load %arg12[%c0_48, %c1_49, %c0_50] : memref<2x18x64xbf16, #tpu.memory_space<vmem>>, vector<2x16x64xbf16>
    tpu.vector_store %arg12[%c0_48, %c1_49, %c0_50], %65 {strides = array<i32>} : memref<2x18x64xbf16, #tpu.memory_space<vmem>>, vector<2x16x64xbf16>,
    %c0_51 = arith.constant 0 : index
    %c0_52 = arith.constant 0 : index
    %67 = vector.load %arg6[%c0_51, %c0_52] : memref<1x64xf32, #tpu.memory_space<vmem>>, vector<1x64xf32>
    %c0_53 = arith.constant 0 : index
    %c0_54 = arith.constant 0 : index
    %68 = vector.load %arg7[%c0_53, %c0_54] : memref<1x4xf32, #tpu.memory_space<vmem>>, vector<1x4xf32>
    %c0_55 = arith.constant 0 : index
    %c0_56 = arith.constant 0 : index
    %69 = vector.load %arg8[%c0_55, %c0_56] : memref<1x4xf32, #tpu.memory_space<vmem>>, vector<1x4xf32>
    %c0_57 = arith.constant 0 : index
    %c0_58 = arith.constant 0 : index
    %c0_59 = arith.constant 0 : index
    %70 = vector.load %arg12[%c0_57, %c0_58, %c0_59] : memref<2x18x64xbf16, #tpu.memory_space<vmem>>, vector<2x16x64xbf16>
    %71 = vector.shape_cast %70 : vector<2x16x64xbf16> to vector<32x64xbf16>
    %c0_60 = arith.constant 0 : index
    %c0_61 = arith.constant 0 : index
    %c0_62 = arith.constant 0 : index
    %72 = vector.load %arg5[%c0_60, %c0_61, %c0_62] : memref<3x64x64xbf16, #tpu.memory_space<vmem>>, vector<1x64x64xbf16>
    %73 = vector.shape_cast %72 : vector<1x64x64xbf16> to vector<64x64xbf16>
    %cst_63 = arith.constant dense<0.000000e+00> : vector<32x64xf32>
    %74 = tpu.matmul %71, %73, %cst_63 {dimension_numbers = #tpu.dot_dimension_numbers<[1], [0], [0], [1], [0, 0, 1, 1], [], []>} : vector<32x64xbf16>, vector<64x64xbf16>, vector<32x64xf32> -> vector<32x64xf32>
    %c0_64 = arith.constant 0 : index
    %c1_65 = arith.constant 1 : index
    %c0_66 = arith.constant 0 : index
    %75 = vector.load %arg12[%c0_64, %c1_65, %c0_66] : memref<2x18x64xbf16, #tpu.memory_space<vmem>>, vector<2x16x64xbf16>
    %76 = vector.shape_cast %75 : vector<2x16x64xbf16> to vector<32x64xbf16>
    %c1_67 = arith.constant 1 : index
    %c0_68 = arith.constant 0 : index
    %c0_69 = arith.constant 0 : index
    %77 = vector.load %arg5[%c1_67, %c0_68, %c0_69] : memref<3x64x64xbf16, #tpu.memory_space<vmem>>, vector<1x64x64xbf16>
    %78 = vector.shape_cast %77 : vector<1x64x64xbf16> to vector<64x64xbf16>
    %cst_70 = arith.constant dense<0.000000e+00> : vector<32x64xf32>
    %79 = tpu.matmul %76, %78, %cst_70 {dimension_numbers = #tpu.dot_dimension_numbers<[1], [0], [0], [1], [0, 0, 1, 1], [], []>} : vector<32x64xbf16>, vector<64x64xbf16>, vector<32x64xf32> -> vector<32x64xf32>
    %80 = arith.addf %74, %79 : vector<32x64xf32>
    %c0_71 = arith.constant 0 : index
    %c2_72 = arith.constant 2 : index
    %c0_73 = arith.constant 0 : index
    %81 = vector.load %arg12[%c0_71, %c2_72, %c0_73] : memref<2x18x64xbf16, #tpu.memory_space<vmem>>, vector<2x16x64xbf16>
    %82 = vector.shape_cast %81 : vector<2x16x64xbf16> to vector<32x64xbf16>
    %c2_74 = arith.constant 2 : index
    %c0_75 = arith.constant 0 : index
    %c0_76 = arith.constant 0 : index
    %83 = vector.load %arg5[%c2_74, %c0_75, %c0_76] : memref<3x64x64xbf16, #tpu.memory_space<vmem>>, vector<1x64x64xbf16>
    %84 = vector.shape_cast %83 : vector<1x64x64xbf16> to vector<64x64xbf16>
    %cst_77 = arith.constant dense<0.000000e+00> : vector<32x64xf32>
    %85 = tpu.matmul %82, %84, %cst_77 {dimension_numbers = #tpu.dot_dimension_numbers<[1], [0], [0], [1], [0, 0, 1, 1], [], []>} : vector<32x64xbf16>, vector<64x64xbf16>, vector<32x64xf32> -> vector<32x64xf32>
    %86 = arith.addf %80, %85 : vector<32x64xf32>
    %87 = vector.broadcast %67 : vector<1x64xf32> to vector<32x64xf32>
    %88 = arith.addf %86, %87 : vector<32x64xf32>
    %cst_78 = arith.constant 0.000000e+00 : f32
    %89 = vector.broadcast %cst_78 : f32 to vector<32x64xf32>
    %90 = arith.cmpf oge, %88, %89 : vector<32x64xf32>
    %cst_79 = arith.constant 5.000000e-03 : f32
    %91 = vector.broadcast %cst_79 : f32 to vector<32x64xf32>
    %92 = arith.mulf %91, %88 : vector<32x64xf32>
    %93 = arith.select %90, %88, %92 : vector<32x64xi1>, vector<32x64xf32>
    %cst_80 = arith.constant dense<0.000000e+00> : vector<64xf32>
    %94 = vector.multi_reduction <add>, %93, %cst_80 [0] : vector<32x64xf32> to vector<64xf32>
    %95 = vector.shape_cast %94 : vector<64xf32> to vector<1x64xf32>
    %96 = arith.mulf %93, %93 : vector<32x64xf32>
    %cst_81 = arith.constant dense<0.000000e+00> : vector<64xf32>
    %97 = vector.multi_reduction <add>, %96, %cst_81 [0] : vector<32x64xf32> to vector<64xf32>
    %98 = vector.shape_cast %97 : vector<64xf32> to vector<1x64xf32>
    %99 = tpu.concatenate %95, %98 in 0 : vector<1x64xf32>, vector<1x64xf32> -> vector<2x64xf32>
    %cst_82 = arith.constant dense<0.000000e+00> : vector<2x4xf32>
    %100 = tpu.matmul %99, %3, %cst_82 {dimension_numbers = #tpu.dot_dimension_numbers<[1], [0], [0], [1], [0, 0, 1, 1], [], []>} : vector<2x64xf32>, vector<64x4xf32>, vector<2x4xf32> -> vector<2x4xf32>
    %101 = vector.extract_strided_slice %100 {offsets = [0, 0], sizes = [1, 4], strides = [1, 1]} : vector<2x4xf32> to vector<1x4xf32>
    %cst_83 = arith.constant 0.001953125 : f32
    %102 = vector.broadcast %cst_83 : f32 to vector<1x4xf32>
    %103 = arith.mulf %101, %102 : vector<1x4xf32>
    %104 = vector.extract_strided_slice %100 {offsets = [1, 0], sizes = [1, 4], strides = [1, 1]} : vector<2x4xf32> to vector<1x4xf32>
    %cst_84 = arith.constant 0.001953125 : f32
    %105 = vector.broadcast %cst_84 : f32 to vector<1x4xf32>
    %106 = arith.mulf %104, %105 : vector<1x4xf32>
    %107 = arith.mulf %103, %103 : vector<1x4xf32>
    %108 = arith.subf %106, %107 : vector<1x4xf32>
    %cst_85 = arith.constant 9.99999974E-6 : f32
    %109 = vector.broadcast %cst_85 : f32 to vector<1x4xf32>
    %110 = arith.addf %108, %109 : vector<1x4xf32>
    %111 = math.rsqrt %110 : vector<1x4xf32>
    %112 = arith.mulf %68, %111 : vector<1x4xf32>
    %113 = arith.mulf %103, %112 : vector<1x4xf32>
    %114 = arith.subf %69, %113 : vector<1x4xf32>
    %115 = tpu.concatenate %112, %114 in 0 : vector<1x4xf32>, vector<1x4xf32> -> vector<2x4xf32>
    %cst_86 = arith.constant dense<0.000000e+00> : vector<2x64xf32>
    %116 = tpu.matmul %115, %4, %cst_86 {dimension_numbers = #tpu.dot_dimension_numbers<[1], [0], [0], [1], [0, 0, 1, 1], [], []>} : vector<2x4xf32>, vector<4x64xf32>, vector<2x64xf32> -> vector<2x64xf32>
    %117 = vector.extract_strided_slice %116 {offsets = [0, 0], sizes = [1, 64], strides = [1, 1]} : vector<2x64xf32> to vector<1x64xf32>
    %118 = vector.broadcast %117 : vector<1x64xf32> to vector<32x64xf32>
    %119 = arith.mulf %93, %118 : vector<32x64xf32>
    %120 = vector.extract_strided_slice %116 {offsets = [1, 0], sizes = [1, 64], strides = [1, 1]} : vector<2x64xf32> to vector<1x64xf32>
    %121 = vector.broadcast %120 : vector<1x64xf32> to vector<32x64xf32>
    %122 = arith.addf %119, %121 : vector<32x64xf32>
    %123 = vector.shape_cast %122 : vector<32x64xf32> to vector<2x16x64xf32>
    %c0_87 = arith.constant 0 : index
    %c0_88 = arith.constant 0 : index
    %c0_89 = arith.constant 0 : index
    %124 = vector.load %arg0[%c0_87, %c0_88, %c0_89] : memref<2x16x64xf32, #tpu.memory_space<vmem>>, vector<2x16x64xf32>
    %125 = arith.addf %123, %124 : vector<2x16x64xf32>
    %c0_90 = arith.constant 0 : index
    %c0_91 = arith.constant 0 : index
    %c0_92 = arith.constant 0 : index
    %126 = vector.load %arg11[%c0_90, %c0_91, %c0_92] : memref<2x16x64xf32, #tpu.memory_space<vmem>>, vector<2x16x64xf32>
    tpu.vector_store %arg11[%c0_90, %c0_91, %c0_92], %125 {strides = array<i32>} : memref<2x16x64xf32, #tpu.memory_space<vmem>>, vector<2x16x64xf32>,
    return
  }
}

</mosaic_0001>

<bundles_post_ra>
// kernel: tile.39
= control target key start
LH: loop header
LB: loop body
LE: loop exit
PB: predicated region body
PF: predicated region fallthrough
CT: control target
= control target key end

     0   :  { %vm6_vm0 = vcmask 1043458   ;;  %s11_s6 = smov 3  ;;  %s14_s7 = smov 12  ;;  %vm8_vm1 = vcmask 31744   ;;  %vm20_vm2 = vcmask 523744   ;;  %vm32_vm3 = vcmask 490944   ;;  %s381_s0 = inlined_call_operand.vmem [shape: f32[4,16,4], index: 0, kind: input, shape index: {}]   ;;  %s382_s1 = inlined_call_operand.vmem [shape: f32[4,64], index: 1, kind: output, shape index: {}]  }
   0x1   :  { %v196_v0 = vld [vmem:[%s381_s0 + $0xf] ss:$16 sm:%s11_s6]   ;;  %s35_s12 = smov 3  ;;  %s38_s15 = smov 12  ;;  %vm44_vm4 = vcmask 458144   ;;  %vm56_vm5 = vcmask 425344  }
   0x2   :  { %v197_v1 = vld [vmem:[%s381_s0 + $0xf] ss:$16 sm:%s14_s7]   ;;  %v200_v3 = vld [vmem:[%s381_s0 + $0xd] ss:$16 sm:%s35_s12]   ;;  %s241_s16 = smov 60   ;;  %s23_s19 = smov 3 }
   0x3   :  { %v17_v2 = vsel %vm6_vm0, %v197_v1, %v196_v0  ;;  %v201_v4 = vld [vmem:[%s381_s0 + $0xd] ss:$16 sm:%s38_s15]   ;;  %s26_s20 = smov 12  ;;  %v198_v6 = vld [vmem:[%s381_s0 + $0xe] ss:$16 sm:%s23_s19]   ;;  %s47_s25 = smov 3 }
   0x4   :  { %18 = vrot.lane.b32.xlu0 %v17_v2, %s241_s16  ;;  %v41_v5 = vsel %vm6_vm0, %v201_v4, %v200_v3  ;;  %v199_v7 = vld [vmem:[%s381_s0 + $0xe] ss:$16 sm:%s26_s20]   ;;  %s242_s26 = smov 52   ;;  %s50_s29 = smov 12  ;;  %vm68_vm6 = vcmask 392544   ;;  %vm80_vm7 = vcmask 359744  }
   0x5   :  { %42 = vrot.lane.b32.xlu1 %v41_v5, %s242_s26  ;;  %v29_v8 = vsel %vm6_vm0, %v199_v7, %v198_v6  ;;  %v202_v9 = vld [vmem:[%s381_s0 + $0xc] ss:$16 sm:%s47_s25]   ;;  %s59_s3 = smov 3  ;;  %s62_s4 = smov 12  ;;  %vm92_vm8 = vcmask 326944   ;;  %vm104_vm9 = vcmask 294144  }
   0x6   :  { %v203_v10 = vld [vmem:[%s381_s0 + $0xc] ss:$16 sm:%s50_s29]   ;;  %s243_s5 = smov 56   ;;  %v204_v12 = vld [vmem:[%s381_s0 + $0xb] ss:$16 sm:%s59_s3]   ;;  %s71_s8 = smov 3 }
   0x7   :  { %v53_v11 = vsel %vm6_vm0, %v203_v10, %v202_v9  ;;  %v205_v13 = vld [vmem:[%s381_s0 + $0xb] ss:$16 sm:%s62_s4]   ;;  %v206_v14 = vld [vmem:[%s381_s0 + $0xa] ss:$16 sm:%s71_s8]   ;;  %s74_s13 = smov 12  ;;  %s244_s14 = smov 48  }
   0x8   :  { %30 = vrot.lane.b32.xlu0 %v29_v8, %s243_s5  ;;  %v65_v15 = vsel %vm6_vm0, %v205_v13, %v204_v12  ;;  %v207_v16 = vld [vmem:[%s381_s0 + $0xa] ss:$16 sm:%s74_s13]   ;;  %s83_s17 = smov 3  ;;  %s86_s18 = smov 12  ;;  %vm116_vm10 = vcmask 261344   ;;  %vm128_vm11 = vcmask 228544  }
   0x9   :  { %54 = vrot.lane.b32.xlu1 %v53_v11, %s244_s14  ;;  %v77_v17 = vsel %vm6_vm0, %v207_v16, %v206_v14  ;;  %v208_v18 = vld [vmem:[%s381_s0 + $0x9] ss:$16 sm:%s83_s17]   ;;  %s95_s23 = smov 3  ;;  %s245_s24 = smov 44   ;;  %vm140_vm12 = vcmask 195744   ;;  %vm152_vm13 = vcmask 162944  }
   0xa   :  { %v209_v19 = vld [vmem:[%s381_s0 + $0x9] ss:$16 sm:%s86_s18]   ;;  %v210_v20 = vld [vmem:[%s381_s0 + $0x8] ss:$16 sm:%s95_s23]   ;;  %s98_s27 = smov 12  ;;  %s107_s30 = smov 3 }
   0xb   :  { %v89_v21 = vsel %vm6_vm0, %v209_v19, %v208_v18  ;;  %v211_v22 = vld [vmem:[%s381_s0 + $0x8] ss:$16 sm:%s98_s27]   ;;  %s110_s2 = smov 12  ;;  %s246_s3 = smov 40   ;;  %v212_v23 = vld [vmem:[%s381_s0 + $0x7] ss:$16 sm:%s107_s30]  }
   0xc   :  { %66 = vrot.lane.b32.xlu0 %v65_v15, %s245_s24  ;;  %s119_s6 = smov 3  ;;  %v101_v24 = vsel %vm6_vm0, %v211_v22, %v210_v20  ;;  %v213_v25 = vld [vmem:[%s381_s0 + $0x7] ss:$16 sm:%s110_s2]   ;;  %s122_s11 = smov 12  ;;  %vm164_vm14 = vcmask 130144   ;;  %vm176_vm15 = vcmask 97344  }
   0xd   :  { %78 = vrot.lane.b32.xlu1 %v77_v17, %s246_s3  ;;  %v214_v26 = vld [vmem:[%s381_s0 + $0x6] ss:$16 sm:%s119_s6]   ;;  %s247_s12 = smov 36   ;;  %s131_s15 = smov 3  ;;  %v113_v28 = vsel %vm6_vm0, %v213_v25, %v212_v23 }
   0xe   :  { %v215_v27 = vld [vmem:[%s381_s0 + $0x6] ss:$16 sm:%s122_s11]   ;;  %s134_s16 = smov 12  ;;  %v216_v29 = vld [vmem:[%s381_s0 + $0x5] ss:$16 sm:%s131_s15]   ;;  %s143_s19 = smov 3 }
   0xf   :  { %s248_s20 = smov 32   ;;  %v217_v30 = vld [vmem:[%s381_s0 + $0x5] ss:$16 sm:%s134_s16]   ;;  %s146_s23 = smov 12  ;;  %v125_v31 = vsel %vm6_vm0, %v215_v27, %v214_v26  ;;  %v218_v32 = vld [vmem:[%s381_s0 + $0x4] ss:$16 sm:%s143_s19]  }
  0x10   :  { %90 = vrot.lane.b32.xlu0 %v89_v21, %s247_s12  ;;  %s155_s26 = smov 3  ;;  %s158_s27 = smov 12  ;;  %v219_v33 = vld [vmem:[%s381_s0 + $0x4] ss:$16 sm:%s146_s23]   ;;  %v137_v34 = vsel %vm6_vm0, %v217_v30, %v216_v29 }
  0x11   :  { %102 = vrot.lane.b32.xlu1 %v101_v24, %s248_s20  ;;  %s249_s28 = smov 28   ;;  %s167_s2 = smov 3  ;;  %v220_v35 = vld [vmem:[%s381_s0 + $0x3] ss:$16 sm:%s155_s26]   ;;  %v149_v37 = vsel %vm6_vm0, %v219_v33, %v218_v32 }
  0x12   :  { %s170_s5 = smov 12  ;;  %s250_s6 = smov 24   ;;  %v221_v36 = vld [vmem:[%s381_s0 + $0x3] ss:$16 sm:%s158_s27]   ;;  %v222_v38 = vld [vmem:[%s381_s0 + $0x2] ss:$16 sm:%s167_s2]  }
  0x13   :  { %s179_s9 = smov 3  ;;  %v223_v39 = vld [vmem:[%s381_s0 + $0x2] ss:$16 sm:%s170_s5]   ;;  %s182_s14 = smov 12  ;;  %v161_v41 = vsel %vm6_vm0, %v221_v36, %v220_v35 }
  0x14   :  { %114 = vrot.lane.b32.xlu0 %v113_v28, %s249_s28  ;;  %s2_s15 = smov 3  ;;  %s251_s16 = smov 20   ;;  %v224_v42 = vld [vmem:[%s381_s0 + $0x1] ss:$16 sm:%s179_s9]   ;;  %v173_v46 = vsel %vm6_vm0, %v223_v39, %v222_v38 }
  0x15   :  { %126 = vrot.lane.b32.xlu1 %v125_v31, %s250_s6  ;;  %v3_v40 = vld [vmem:[%s381_s0] ss:$16 sm:%s2_s15]   ;;  %s4_s19 = smov 12  ;;  %s252_s24 = smov 16  }
  0x16   :  { %v5_v43 = vld [vmem:[%s381_s0] ss:$16 sm:%s4_s19]   ;;  %v225_v44 = vld [vmem:[%s381_s0 + $0x1] ss:$16 sm:%s182_s14]   ;;  %s253_s0 = smov 12   ;;  %s254_s27 = smov 8  }
  0x17   :  { %v7_v45 = vsel %vm6_vm0, %v5_v43, %v3_v40  ;;  %v185_v47 = vsel %vm6_vm0, %v225_v44, %v224_v42  ;;  %s255_s28 = smov 4   ;;  %vm188_vm0 = vcmask 64544  }
  0x18   :  { %138 = vrot.lane.b32.xlu0 %v137_v34, %s251_s16  ;;  %9 = vst.msk [vmem:[#allocation0] sm:$0xf] %vm8_vm1, %v7_v45  }
  0x19   :  { %150 = vrot.lane.b32.xlu1 %v149_v37, %s252_s24 }
  0x1c   :  { %162 = vrot.lane.b32.xlu0 %v161_v41, %s253_s0 }
  0x1d   :  { %174 = vrot.lane.b32.xlu1 %v173_v46, %s254_s27 }
  0x20   :  { %186 = vrot.lane.b32.xlu0 %v185_v47, %s255_s28 }
  0x76   :  { %v19_v48 = vpop.permute.xlu0 %18  }
  0x77   :  { %21 = vst.msk [vmem:[#allocation0] sm:$0xf] %vm20_vm2, %v19_v48   ;;  %v43_v49 = vpop.permute.xlu1 %42  }
  0x7a   :  { %v31_v50 = vpop.permute.xlu0 %30  }
  0x7b   :  { %33 = vst.msk [vmem:[#allocation0] sm:$0xf] %vm32_vm3, %v31_v50   ;;  %v55_v51 = vpop.permute.xlu1 %54  }
  0x7c   :  { %45 = vst.msk [vmem:[#allocation0] sm:$0xf] %vm44_vm4, %v43_v49  }
  0x7d   :  { %57 = vst.msk [vmem:[#allocation0] sm:$0xf] %vm56_vm5, %v55_v51  }
  0x7e   :  { %v67_v52 = vpop.permute.xlu0 %66  }
  0x7f   :  { %69 = vst.msk [vmem:[#allocation0] sm:$0xf] %vm68_vm6, %v67_v52   ;;  %v79_v53 = vpop.permute.xlu1 %78  }
  0x80   :  { %81 = vst.msk [vmem:[#allocation0] sm:$0xf] %vm80_vm7, %v79_v53  }
  0x82   :  { %v91_v54 = vpop.permute.xlu0 %90  }
  0x83   :  { %93 = vst.msk [vmem:[#allocation0] sm:$0xf] %vm92_vm8, %v91_v54   ;;  %v103_v55 = vpop.permute.xlu1 %102  }
  0x84   :  { %105 = vst.msk [vmem:[#allocation0] sm:$0xf] %vm104_vm9, %v103_v55  }
  0x86   :  { %v115_v56 = vpop.permute.xlu0 %114  }
  0x87   :  { %117 = vst.msk [vmem:[#allocation0] sm:$0xf] %vm116_vm10, %v115_v56   ;;  %v127_v57 = vpop.permute.xlu1 %126  }
  0x88   :  { %129 = vst.msk [vmem:[#allocation0] sm:$0xf] %vm128_vm11, %v127_v57  }
  0x8a   :  { %v139_v58 = vpop.permute.xlu0 %138  }
  0x8b   :  { %141 = vst.msk [vmem:[#allocation0] sm:$0xf] %vm140_vm12, %v139_v58   ;;  %v151_v59 = vpop.permute.xlu1 %150  }
  0x8c   :  { %153 = vst.msk [vmem:[#allocation0] sm:$0xf] %vm152_vm13, %v151_v59  }
  0x8e   :  { %v163_v60 = vpop.permute.xlu0 %162  }
  0x8f   :  { %165 = vst.msk [vmem:[#allocation0] sm:$0xf] %vm164_vm14, %v163_v60   ;;  %v175_v61 = vpop.permute.xlu1 %174  }
  0x90   :  { %177 = vst.msk [vmem:[#allocation0] sm:$0xf] %vm176_vm15, %v175_v61  }
  0x92   :  { %v187_v62 = vpop.permute.xlu0 %186  }
  0x93   :  { %189 = vst.msk [vmem:[#allocation0] sm:$0xf] %vm188_vm0, %v187_v62  }
  0x9a   :  { %v193_v63 = vld [vmem:[#allocation0] sm:$0xf] }
  0x9b   :  { %195 = vst [vmem:[%s382_s1] sm:$0xf] %v193_v63 }

// kernel: res_block.1
= control target key start
LH: loop header
LB: loop body
LE: loop exit
PB: predicated region body
PF: predicated region fallthrough
CT: control target
= control target key end

     0   :  { %vm40_vm0 = vsmask.f32 256  ;;  %vm39_vm1 = vcmask 516096   ;;  %v42_v2 = vld [vmem:[#allocation2] sm:$0x1]  ;;  %vm123_vm5 = vcmask 519168   ;;  %s2306_s1 = inlined_call_operand.vmem [shape: bf16[3,64,64], index: 1, kind: input, shape index: {}]   ;;  %s2307_s0 = inlined_call_operand.vmem [shape: f32[2,16,64], index: 0, kind: input, shape index: {}]   ;;  %s2308_s9 = inlined_call_operand.vmem [shape: f32[64,4], index: 9, kind: input, shape index: {}]   ;;  %s2309_s2 = inlined_call_operand.vmem [shape: f32[1,64], index: 2, kind: input, shape index: {}]   ;;  %s2310_s10 = inlined_call_operand.vmem [shape: f32[4,64], index: 10, kind: input, shape index: {}]   ;;  %s2311_s3 = inlined_call_operand.vmem [shape: f32[1,4], index: 3, kind: input, shape index: {}]   ;;  %s2312_s4 = inlined_call_operand.vmem [shape: f32[1,4], index: 4, kind: input, shape index: {}]   ;;  %s2313_s5 = inlined_call_operand.vmem [shape: bf16[3,64,64], index: 5, kind: input, shape index: {}]   ;;  %s2314_s6 = inlined_call_operand.vmem [shape: f32[1,64], index: 6, kind: input, shape index: {}]   ;;  %s2315_s7 = inlined_call_operand.vmem [shape: f32[1,4], index: 7, kind: input, shape index: {}]   ;;  %s2316_s8 = inlined_call_operand.vmem [shape: f32[1,4], index: 8, kind: input, shape index: {}]   ;;  %s2317_s11 = inlined_call_operand.vmem [shape: f32[2,16,64], index: 11, kind: output, shape index: {}]  }
   0x1   :  { %v1797_v0 = vld [vmem:[%s2306_s1 + $0x20] sm:$0xff]   ;;  %v1798_v1 = vld [vmem:[%s2306_s1 + $0x28] sm:$0xff]   ;;  %v1799_v3 = vld [vmem:[%s2306_s1 + $0x30] sm:$0xff]   ;;  %vm48_vm3 = vsmask.f32 7938  ;;  %vm247_vm12 = vcmask 523264  }
   0x2   :  { %1633 = vmatprep.subr.bf16.mxu0 %v1797_v0  ;;  %vm1903_vm2 = vmand %vm39_vm1, %vm40_vm0  ;;  %v45_v5 = vld [vmem:[#allocation2 + $0xc] sm:$0x1]  ;;  %v50_v6 = vld [vmem:[#allocation2 + $0x8] sm:$0x1]  ;;  %vm81_vm6 = vsmask.f32 4368 }
   0x3   :  { %1634 = vmatpush3.bf16.msra.mxu0 %v1797_v0  ;;  %v43_v7 = vsel %vm1903_vm2, 0, %v42_v2  ;;  %v46_v8 = vsel %vm1903_vm2, 0, %v45_v5  ;;  %vm49_vm4 = vmand %vm39_vm1, %vm48_vm3  ;;  %v53_v9 = vld [vmem:[#allocation2 + $0x14] sm:$0x1]  ;;  %v65_v10 = vld [vmem:[%s2307_s0] sm:$0xff]  ;;  %vm398_vm13 = vcmask 1042432  }
   0x4   :  { %1635 = vmatprep.subr.bf16.mxu0 %v1798_v1  ;;  %44 = vst [vmem:[#allocation2] sm:$0x1] %v43_v7  ;;  %47 = vst [vmem:[#allocation2 + $0xc] sm:$0x1] %v46_v8  ;;  %v51_v11 = vsel %vm49_vm4, 0, %v50_v6  ;;  %v54_v12 = vsel %vm49_vm4, 0, %v53_v9  ;;  %v1567_v15 = vpack.c.bf16 %v65_v10, %v65_v10 }
   0x5   :  { %v66_v13 = vld [vmem:[%s2307_s0 + $0x8] sm:$0xff]  ;;  %v67_v14 = vld [vmem:[%s2307_s0 + $0x10] sm:$0xff]  ;;  %v1800_v16 = vld [vmem:[%s2306_s1 + $0x38] sm:$0xff]   ;;  %52 = vst [vmem:[#allocation2 + $0x8] sm:$0x1] %v51_v11  ;;  %vm399_vm14 = vcmask 1046532  }
   0x6   :  { %55 = vst [vmem:[#allocation2 + $0x14] sm:$0x1] %v54_v12  ;;  %v1568_v17 = vpack.c.bf16 %v66_v13, %v66_v13  ;;  %v1569_v18 = vpack.c.bf16 %v67_v14, %v67_v14  ;;  %v84_v19 = vshrl.u32 %v1567_v15, 16  ;;  %v87_v20 = vshll.u32 %v1567_v15, 16  ;;  %v68_v25 = vld [vmem:[%s2307_s0 + $0x18] sm:$0xff]  ;;  %vm1929_vm7 = vmand %vm123_vm5, %vm48_vm3  ;;  %v1942_v34 = vld [vmem:[%s2306_s1] sm:$0xff]  }
   0x7   :  { %1636 = vmatpush3.bf16.msra.mxu0 %v1798_v1  ;;  %v1570_v27 = vpack.c.bf16 %v68_v25, %v68_v25  ;;  %vm1935_vm8 = vmor %vm40_vm0, %vm81_vm6  ;;  %vm157_vm9 = vsmask.f32 3328  ;;  %vm158_vm10 = vsmask.f32 7440  ;;  %vm1830_vm0 = vmmov 0  }
   0x8   :  { %1637 = vmatprep.subr.bf16.mxu0 %v1799_v3  ;;  %v92_v21 = vshrl.u32 %v1568_v17, 16  ;;  %v95_v22 = vshll.u32 %v1568_v17, 16  ;;  %v101_v23 = vshrl.u32 %v1569_v18, 16  ;;  %v104_v24 = vshll.u32 %v1569_v18, 16  ;;  %vm1977_vm11 = vmor %vm157_vm9, %vm158_vm10 }
   0x9   :  { %v86_v26 = vrot.slane %v84_v19, 7  ;;  %v109_v35 = vshrl.u32 %v1570_v27, 16  ;;  %v112_v36 = vshll.u32 %v1570_v27, 16  ;;  %vm2007_vm15 = vmor %vm398_vm13, %vm399_vm14  ;;  %vm565_vm9 = vcmask 1040384  }
   0xa   :  { %v94_v28 = vrot.slane %v92_v21, 7  ;;  %v103_v29 = vrot.slane %v101_v23, 7  ;;  %vm679_vm10 = vcmask 1043456   ;;  %vm675_vm13 = vcmask 31744  }
   0xb   :  { %1638 = vmatpush3.bf16.msra.mxu0 %v1799_v3  ;;  %v89_v32 = vor.u32 %v87_v20, %v86_v26  ;;  %v90_v33 = vrot.slane %v86_v26, 4  ;;  %v125_v40 = vld [vmem:[#allocation2] sm:$0xf]  ;;  %v133_v41 = vld [vmem:[#allocation2 + $0xc] sm:$0xf]  ;;  %v111_v45 = vrot.slane %v109_v35, 7 }
   0xc   :  { %1639 = vmatprep.subr.bf16.mxu0 %v1800_v16  ;;  %v97_v37 = vor.u32 %v95_v22, %v94_v28  ;;  %v99_v38 = vrot.slane %v94_v28, 4  ;;  %v106_v39 = vor.u32 %v104_v24, %v103_v29  ;;  %v130_v43 = vld [vmem:[#allocation2 + $0x8] sm:$0x1]  ;;  %v107_v44 = vrot.slane %v103_v29, 4 }
   0xd   :  { %v126_v42 = vsel %vm1929_vm7, %v89_v32, %v125_v40  ;;  %v137_v46 = vld [vmem:[#allocation2 + $0x14] sm:$0x1]  ;;  %v114_v50 = vor.u32 %v112_v36, %v111_v45  ;;  %v116_v51 = vrot.slane %v111_v45, 4  ;;  %v1802_v36 = vld [vmem:[%s2306_s1 + $0x8] sm:$0xff]  }
   0xe   :  { %v98_v47 = vsel %vm1935_vm8, %v90_v33, %v97_v37  ;;  %127 = vst [vmem:[#allocation2] sm:$0xf] %v126_v42  ;;  %v131_v48 = vsel %vm1903_vm2, %v99_v38, %v130_v43  ;;  %v134_v49 = vsel %vm1929_vm7, %v106_v39, %v133_v41  ;;  %v1803_v37 = vld [vmem:[%s2306_s1 + $0x10] sm:$0xff]  }
   0xf   :  { %1640 = vmatpush3.bf16.msra.mxu0 %v1800_v16  ;;  %129 = vst.msk [vmem:[#allocation2 + $0x4] sm:$0xf] %vm123_vm5, %v98_v47  ;;  %132 = vst [vmem:[#allocation2 + $0x8] sm:$0x1] %v131_v48  ;;  %v115_v52 = vsel %vm1935_vm8, %v107_v44, %v114_v50  ;;  %v138_v53 = vsel %vm1903_vm2, %v116_v51, %v137_v46  ;;  %v1805_v44 = vld [vmem:[%s2306_s1 + $0x40] sm:$0xff]   ;;  %v1808_v51 = vld [vmem:[%s2306_s1 + $0x50] sm:$0xff]  }
  0x10   :  { %135 = vst [vmem:[#allocation2 + $0xc] sm:$0xf] %v134_v49  ;;  %1645 = vmatprep.subr.bf16.mxu0 %v1942_v34  ;;  %136 = vst.msk [vmem:[#allocation2 + $0x10] sm:$0xf] %vm123_vm5, %v115_v52  ;;  %v1807_v49 = vld [vmem:[%s2306_s1 + $0x48] sm:$0xff]  }
  0x11   :  { %139 = vst [vmem:[#allocation2 + $0x14] sm:$0x1] %v138_v53 }
  0x15   :  { %v143_v54 = vld [vmem:[#allocation2] sm:$0xf] }
  0x16   :  { %v1959_v55 = vld [vmem:[#allocation2 + $0x4] sm:$0xf]  ;;  %v1961_v56 = vld [vmem:[#allocation2 + $0x8] sm:$0x1]  ;;  %v161_v57 = vshrl.u32 %v143_v54, 16  ;;  %v164_v58 = vshll.u32 %v143_v54, 16 }
  0x17   :  { %v170_v59 = vshll.u32 %v1959_v55, 16  ;;  %v174_v60 = vshrl.u32 %v1959_v55, 16  ;;  %v180_v61 = vshll.u32 %v1961_v56, 16  ;;  %v1966_v62 = vld [vmem:[#allocation2 + $0xc] sm:$0xf]  ;;  %v1487_v33 = vcombine.low %v143_v54, %v1959_v55 }
  0x18   :  { %v163_v63 = vrot.slane %v161_v57, 4  ;;  %v166_v0 = vrot.slane %v164_v58, 5  ;;  %v185_v1 = vshrl.u32 %v1966_v62, 16  ;;  %v188_v2 = vshll.u32 %v1966_v62, 16  ;;  %v1970_v6 = vld [vmem:[#allocation2 + $0x10] sm:$0xf] }
  0x19   :  { %v172_v3 = vrot.slane %v170_v59, 5  ;;  %v176_v5 = vrot.slane %v174_v60, 4  ;;  %v1972_v8 = vld [vmem:[#allocation2 + $0x14] sm:$0x1]  ;;  %v194_v11 = vshll.u32 %v1970_v6, 16  ;;  %v182_v14 = vrot.slane %v180_v61, 5 }
  0x1a   :  { %v167_v7 = vor.u32 %v166_v0, %v163_v63  ;;  %v187_v9 = vrot.slane %v185_v1, 4  ;;  %v190_v10 = vrot.slane %v188_v2, 5  ;;  %v198_v15 = vshrl.u32 %v1970_v6, 16  ;;  %v392_v39 = vld [vmem:[#allocation2] sm:$0xe]  ;;  %v57_v61 = vld [vmem:[%s2308_s9 + $0x8] sm:$0xff] }
  0x1b   :  { %v177_v13 = vor.u32 %v176_v5, %v172_v3  ;;  %v204_v16 = vshll.u32 %v1972_v8, 16  ;;  %v196_v19 = vrot.slane %v194_v11, 5  ;;  %v403_v38 = vrot.slane %v1959_v55, 5  ;;  %v393_v52 = vld [vmem:[#allocation2 + $0xc] sm:$0xe]  ;;  %v56_v60 = vld [vmem:[%s2308_s9] sm:$0xff] }
  0x1c   :  { %v168_v17 = vrot.slane %v167_v7, 4  ;;  %v191_v18 = vor.u32 %v190_v10, %v187_v9  ;;  %v200_v21 = vrot.slane %v198_v15, 4  ;;  %v406_v40 = vrot.slane %v1961_v56, 5  ;;  %v1809_v56 = vld [vmem:[%s2306_s1 + $0x58] sm:$0xff]   ;;  %v58_v63 = vld [vmem:[%s2308_s9 + $0x10] sm:$0xff]  ;;  %v60_v5 = vld [vmem:[%s2308_s9 + $0x20] sm:$0xff] }
  0x1d   :  { %v178_v20 = vrot.slane %v177_v13, 4  ;;  %v206_v26 = vrot.slane %v204_v16, 5  ;;  %v1495_v41 = vrot.slane %v392_v39, 9  ;;  %v405_v42 = vrot.slane %v403_v38, 4  ;;  %v59_v0 = vld [vmem:[%s2308_s9 + $0x18] sm:$0xff] }
  0x1e   :  { %v173_v22 = vsel %vm1977_vm11, %v168_v17, %v172_v3  ;;  %v192_v23 = vrot.slane %v191_v18, 4  ;;  %v201_v25 = vor.u32 %v200_v21, %v196_v19  ;;  %v1488_v47 = vcombine.low %v1966_v62, %v1970_v6  ;;  %v63_v9 = vld [vmem:[%s2308_s9 + $0x38] sm:$0xff]  ;;  %v1513_v11 = vld [vmem:[%s2309_s2] ss:$0 sm:$0xff] }
  0x1f   :  { %v183_v24 = vsel %vm1977_vm11, %v178_v20, %v182_v14  ;;  %v404_v45 = vsel %vm2007_vm15, %v1495_v41, %v403_v38  ;;  %v407_v46 = vsel %vm2007_vm15, %v405_v42, %v406_v40  ;;  %v410_v50 = vrot.slane %v1970_v6, 5  ;;  %v61_v6 = vld [vmem:[%s2308_s9 + $0x28] sm:$0xff] }
  0x20   :  { %v1479_v27 = vcombine.low %v173_v22, %v183_v24  ;;  %v197_v28 = vsel %vm1977_vm11, %v192_v23, %v196_v19  ;;  %v202_v29 = vrot.slane %v201_v25, 4  ;;  %v1505_v48 = vcombine.low %v404_v45, %v407_v46 }
  0x21   :  { %v1496_v53 = vrot.slane %v393_v52, 9  ;;  %v412_v54 = vrot.slane %v410_v50, 4  ;;  %v413_v55 = vrot.slane %v1972_v8, 5  ;;  %v1754_v62 = vpack.c.bf16 %v57_v61, %v56_v60  ;;  %v62_v8 = vld [vmem:[%s2308_s9 + $0x30] sm:$0xff] }
  0x22   :  { %1641 = vmatprep.mubr.msk.bf16.mxu0 %vm247_vm12, %v1479_v27  ;;  %v207_v32 = vsel %vm1977_vm11, %v202_v29, %v206_v26  ;;  %v1829_v1 = vmov 0.0|0.0   ;;  %v1831_v2 = vmov 0.0   ;;  %v1757_v3 = vpack.c.bf16 %v59_v0, %v58_v63  ;;  %v2106_v63 = vld [vmem:[%s2310_s10] sm:$0xf] }
  0x23   :  { %v1480_v35 = vcombine.low %v197_v28, %v207_v32  ;;  %v411_v57 = vsel %vm2007_vm15, %v1496_v53, %v410_v50  ;;  %v414_v58 = vsel %vm2007_vm15, %v412_v54, %v413_v55  ;;  %1753 = vmatprep.subr.bf16.mxu1 %v1829_v1  ;;  %1685 = vmatprep.mubr.msk.f32.mxu1 %vm1830_vm0, %v1831_v2 }
  0x24   :  { %v1506_v59 = vcombine.low %v411_v57, %v414_v58  ;;  %1755 = vmatpush3.bf16.msra.mxu1 %v1754_v62  ;;  %v1760_v7 = vpack.c.bf16 %v61_v6, %v60_v5  ;;  %v1763_v10 = vpack.c.bf16 %v63_v9, %v62_v8  ;;  %v1832_v9 = vmov 1966171168  }
  0x25   :  { %1642 = vmatmul.mubr.msk.bf16.vlgmr.msra.gmra.mrb[0].mxu0 %vm247_vm12, %v1480_v35  ;;  %1756 = vmatprep.subr.bf16.mxu1 %v1829_v1 }
  0x26   :  { %1646 = vmatpush3.bf16.msra.mxu0 %v1942_v34  ;;  %1653 = vmatprep.mubr.msk.bf16.mxu0 %vm247_vm12, %v1487_v33  ;;  %v1804_v34 = vld [vmem:[%s2306_s1 + $0x18] sm:$0xff]  }
  0x27   :  { %1647 = vmatprep.subr.bf16.mxu0 %v1802_v36 }
  0x28   :  { %1758 = vmatpush3.bf16.msra.mxu1 %v1757_v3 }
  0x29   :  { %1759 = vmatprep.subr.bf16.mxu1 %v1829_v1 }
  0x2a   :  { %1648 = vmatpush3.bf16.msra.mxu0 %v1802_v36 }
  0x2b   :  { %1649 = vmatprep.subr.bf16.mxu0 %v1803_v37 }
  0x2c   :  { %1761 = vmatpush3.bf16.msra.mxu1 %v1760_v7 }
  0x2d   :  { %1762 = vmatprep.subr.bf16.mxu1 %v1829_v1 }
  0x2e   :  { %1650 = vmatpush3.bf16.msra.mxu0 %v1803_v37 }
  0x2f   :  { %1651 = vmatprep.subr.bf16.mxu0 %v1804_v34 }
  0x30   :  { %1764 = vmatpush3.bf16.msra.mxu1 %v1763_v10 }
  0x31   :  { %1688 = vmatprep.subr.mxu1 %v1831_v2 }
  0x32   :  { %1652 = vmatpush3.bf16.msra.mxu0 %v1804_v34 }
  0x33   :  { %1657 = vmatprep.subr.bf16.mxu0 %v1805_v44 }
  0x35   :  { %1654 = vmatmul.mubr.msk.bf16.vlgmr.msra.gmra.mrb[0].mxu0 %vm247_vm12, %v1488_v47 }
  0x36   :  { %1658 = vmatpush3.bf16.msra.mxu0 %v1805_v44  ;;  %1665 = vmatprep.mubr.msk.bf16.mxu0 %vm247_vm12, %v1505_v48 }
  0x37   :  { %1659 = vmatprep.subr.bf16.mxu0 %v1807_v49 }
  0x3a   :  { %1660 = vmatpush3.bf16.msra.mxu0 %v1807_v49 }
  0x3b   :  { %1661 = vmatprep.subr.bf16.mxu0 %v1808_v51 }
  0x3e   :  { %1662 = vmatpush3.bf16.msra.mxu0 %v1808_v51 }
  0x3f   :  { %1663 = vmatprep.subr.bf16.mxu0 %v1809_v56 }
  0x42   :  { %1664 = vmatpush3.bf16.msra.mxu0 %v1809_v56 }
  0x43   :  { %1765 = vmatprep.subr.bf16.mxu0 %v1829_v1 }
  0x45   :  { %1666 = vmatmul.mubr.msk.bf16.vlgmr.msra.gmra.mrb[0].mxu0 %vm247_vm12, %v1506_v59 }
  0x46   :  { %1767 = vmatpush3.bf16.msra.mxu0 %v1754_v62  ;;  %1745 = vmatprep.mubr.msk.f32.mxu0 %vm1830_vm0, %v1831_v2 }
  0x47   :  { %1768 = vmatprep.subr.bf16.mxu0 %v1829_v1 }
  0x4a   :  { %1770 = vmatpush3.bf16.msra.mxu0 %v1757_v3 }
  0x4b   :  { %1771 = vmatprep.subr.bf16.mxu0 %v1829_v1 }
  0x4e   :  { %1773 = vmatpush3.bf16.msra.mxu0 %v1760_v7 }
  0x4f   :  { %1774 = vmatprep.subr.bf16.mxu0 %v1829_v1 }
  0x52   :  { %1776 = vmatpush3.bf16.msra.mxu0 %v1763_v10  ;;  %v650_v10 = vunpack.c.l.s4 %v1832_v9 }
  0x53   :  { %1748 = vmatprep.subr.mxu0 %v1831_v2 }
 0x118   :  { %v1667_v13 = vpop.f32.mrb[0].mxu0 }
 0x119   :  { %v521_v14 = vadd.f32 %v1667_v13, %v1513_v11  ;;  %v494_v15 = vpop.f32.mrb[1].mxu0  ;;  %v651_v13 = vunpack.c.0.s8 %v650_v10  ;;  %v828_v10 = vld [vmem:[#allocation2 + $0xc] sm:$0xf] }
 0x11a   :  { %v519_v16 = vadd.f32 %v1513_v11, %v494_v15  ;;  %v1668_v17 = vpop.f32.mrb[2].mxu0 }
 0x11b   :  { %v529_v18 = vmul.f32 0.005, %v521_v14  ;;  %v522_v19 = vadd.f32 %v1668_v17, %v1513_v11  ;;  %v497_v20 = vpop.f32.mrb[3].mxu0  ;;  %vm525_vm1 = vcmp.ge.f32.partialorder %v521_v14, 0.0 }
 0x11c   :  { %vm523_vm3 = vcmp.ge.f32.partialorder %v519_v16, 0.0  ;;  %v527_v21 = vmul.f32 0.005, %v519_v16  ;;  %v520_v22 = vadd.f32 %v1513_v11, %v497_v20  ;;  %v652_v11 = vlaneseq }
 0x11d   :  { %v530_v23 = vmul.f32 0.005, %v522_v19  ;;  %vm526_vm4 = vcmp.ge.f32.partialorder %v522_v19, 0.0  ;;  %v2073_v25 = vsel %vm525_vm1, %v521_v14, %v529_v18 }
 0x11e   :  { %v2071_v24 = vsel %vm523_vm3, %v519_v16, %v527_v21  ;;  %vm524_vm6 = vcmp.ge.f32.partialorder %v520_v22, 0.0  ;;  %v528_v26 = vmul.f32 0.005, %v520_v22  ;;  %v550_v32 = vmul.f32 %v2073_v25, %v2073_v25 }
 0x11f   :  { %v548_v27 = vmul.f32 %v2071_v24, %v2071_v24  ;;  %v2077_v28 = vsel %vm526_vm4, %v522_v19, %v530_v23  ;;  %v535_v33 = vsel %vm247_vm12, %v2071_v24, 0.0  ;;  %v538_v38 = vsel %vm247_vm12, %v2073_v25, 0.0  ;;  %v141_v19 = vld [vmem:[%s2311_s3] sm:$0x1] }
 0x120   :  { %v2079_v29 = vsel %vm524_vm6, %v520_v22, %v528_v26  ;;  %v551_v40 = vmul.f32 %v2077_v28, %v2077_v28  ;;  %v555_v44 = vsel %vm247_vm12, %v550_v32, 0.0  ;;  %v540_v45 = vsel %vm247_vm12, %v2077_v28, 0.0  ;;  %v142_v22 = vld [vmem:[%s2312_s4] sm:$0x1] }
 0x121   :  { %v536_v35 = vsel %vm247_vm12, %v2079_v29, 0.0  ;;  %v549_v36 = vmul.f32 %v2079_v29, %v2079_v29  ;;  %v552_v39 = vsel %vm247_vm12, %v548_v27, 0.0  ;;  %v2110_v14 = vshrl.u32 %v652_v11, 7  ;;  %v832_v11 = vld [vmem:[#allocation2 + $0x14] sm:$0x1] }
 0x122   :  { %v537_v37 = vadd.f32 %v536_v35, %v535_v33  ;;  %v557_v48 = vsel %vm247_vm12, %v551_v40, 0.0  ;;  %v1810_v35 = vld [vmem:[%s2313_s5 + $0x20] sm:$0xff]  }
 0x123   :  { %v553_v34 = vsel %vm247_vm12, %v549_v36, 0.0  ;;  %v2113_v15 = vsub.s32 %v651_v13, %v2110_v14  ;;  %v2124_v26 = vsub.s32 0, %v2110_v14  ;;  %v1811_v36 = vld [vmem:[%s2313_s5 + $0x28] sm:$0xff]   ;;  %v763_v40 = vsub.s32 1, %v2110_v14  ;;  %v1453_v14 = vld [vmem:[%s2307_s0 + $0x10] sm:$0xff] }
 0x124   :  { %v539_v41 = vadd.f32 %v538_v38, %v537_v37  ;;  %v554_v42 = vadd.f32 %v553_v34, %v552_v39  ;;  %v1812_v37 = vld [vmem:[%s2313_s5 + $0x30] sm:$0xff]   ;;  %v1813_v38 = vld [vmem:[%s2313_s5 + $0x38] sm:$0xff]   ;;  %v2144_v39 = vld [vmem:[%s2313_s5] sm:$0xff]  }
 0x126   :  { %v541_v46 = vadd.f32 %v540_v45, %v539_v41  ;;  %v556_v47 = vadd.f32 %v555_v44, %v554_v42 }
 0x128   :  { %v542_v49 = vrot.slane %v541_v46, 4  ;;  %v558_v50 = vadd.f32 %v557_v48, %v556_v47 }
 0x12a   :  { %v543_v51 = vadd.f32 %v542_v49, %v541_v46  ;;  %v559_v52 = vrot.slane %v558_v50, 4 }
 0x12c   :  { %v544_v53 = vrot.slane %v543_v51, 2  ;;  %v560_v54 = vadd.f32 %v559_v52, %v558_v50 }
 0x12e   :  { %v545_v55 = vadd.f32 %v544_v53, %v543_v51  ;;  %v561_v56 = vrot.slane %v560_v54, 2 }
 0x130   :  { %v546_v57 = vrot.slane %v545_v55, 1  ;;  %v562_v58 = vadd.f32 %v561_v56, %v560_v54 }
 0x132   :  { %v563_v59 = vrot.slane %v562_v58, 1  ;;  %v547_v60 = vadd.f32 %v546_v57, %v545_v55 }
 0x134   :  { %v564_v61 = vadd.f32 %v563_v59, %v562_v58 }
 0x136   :  { %v566_v62 = vsel %vm565_vm9, %v547_v60, %v564_v61 }
 0x137   :  { %1686 = vmatmul.mubr.msk.f32.vlgmr.msra.gmra.mrb[0].mxu1 %vm247_vm12, %v566_v62 }
 0x138   :  { %1690 = vmatprep.mubr.msk.f32.mxu1 %vm1830_vm0, %v1831_v2  ;;  %1689 = vmatpush3.msk.msra.mxu1 %vm679_vm10, %v2106_v63 }
 0x139   :  { %1693 = vmatprep.subr.bf16.mxu1 %v1810_v35 }
 0x20a   :  { %v636_v0 = vpop.f32.mrb[0].mxu1 }
 0x20b   :  { %v640_v1 = vmul.f32 0.001953125, %v636_v0  ;;  %v1687_v3 = vpop.f32.mrb[1].mxu1  ;;  %v821_v0 = vld [vmem:[#allocation2] sm:$0xf] }
 0x20d   :  { %v641_v5 = vmul.f32 %v640_v1, %v640_v1 }
 0x20f   :  { %v643_v6 = vrot.slane %v641_v5, 7  ;;  %v825_v5 = vld [vmem:[#allocation2 + $0x8] sm:$0x1] }
 0x211   :  { %v645_v7 = vsub.f32 %v640_v1, %v643_v6 }
 0x213   :  { %v646_v8 = vadd.f32 1e-05, %v645_v7 }
 0x215   :  { %1824 = vrsqrt.f32 %v646_v8 }
 0x21f   :  { %v1825_v16 = vpop.eup %1824 }
 0x220   :  { %v655_v17 = vrot.slane %v1825_v16, %v2113_v15 }
 0x222   :  { %v656_v18 = vcombine.high %v655_v17, %v655_v17 }
 0x224   :  { %v663_v20 = vrot.slane %v656_v18, %v2113_v15 }
 0x226   :  { %v665_v21 = vmul.f32 %v663_v20, %v141_v19 }
 0x228   :  { %v666_v23 = vmul.f32 %v665_v21, %v640_v1 }
 0x22a   :  { %v667_v27 = vsub.f32 %v142_v22, %v666_v23 }
 0x22c   :  { %v672_v32 = vrot.slane %v667_v27, %v2124_v26 }
 0x22e   :  { %v674_v33 = vsel %vm565_vm9, %v665_v21, %v672_v32 }
 0x22f   :  { %1691 = vmatmul.mubr.msk.f32.vlgmr.msra.gmra.mrb[2].mxu1 %vm675_vm13, %v674_v33 }
 0x230   :  { %1694 = vmatpush3.bf16.msra.mxu1 %v1810_v35 }
 0x231   :  { %1695 = vmatprep.subr.bf16.mxu1 %v1811_v36 }
 0x234   :  { %1696 = vmatpush3.bf16.msra.mxu1 %v1811_v36 }
 0x235   :  { %1697 = vmatprep.subr.bf16.mxu1 %v1812_v37 }
 0x238   :  { %1698 = vmatpush3.bf16.msra.mxu1 %v1812_v37 }
 0x239   :  { %1699 = vmatprep.subr.bf16.mxu1 %v1813_v38 }
 0x23c   :  { %1700 = vmatpush3.bf16.msra.mxu1 %v1813_v38 }
 0x23d   :  { %1705 = vmatprep.subr.bf16.mxu1 %v2144_v39 }
 0x302   :  { %v749_v34 = vpop.f32.mrb[2].mxu1 }
 0x303   :  { %v756_v41 = vrot.slane %v749_v34, %v2124_v26  ;;  %v1692_v42 = vpop.f32.mrb[3].mxu1  ;;  %v764_v44 = vrot.slane %v749_v34, %v763_v40 }
 0x305   :  { %v757_v45 = vmul.f32 %v756_v41, %v2071_v24  ;;  %v758_v46 = vmul.f32 %v756_v41, %v2079_v29  ;;  %v759_v47 = vmul.f32 %v756_v41, %v2073_v25  ;;  %v760_v48 = vmul.f32 %v756_v41, %v2077_v28 }
 0x307   :  { %v765_v49 = vadd.f32 %v764_v44, %v757_v45  ;;  %v766_v50 = vadd.f32 %v764_v44, %v758_v46  ;;  %v767_v51 = vadd.f32 %v764_v44, %v759_v47  ;;  %v768_v52 = vadd.f32 %v764_v44, %v760_v48 }
 0x309   :  { %v1571_v53 = vpack.c.bf16 %v765_v49, %v765_v49  ;;  %v1572_v54 = vpack.c.bf16 %v766_v50, %v766_v50  ;;  %v1573_v55 = vpack.c.bf16 %v767_v51, %v767_v51  ;;  %v1574_v56 = vpack.c.bf16 %v768_v52, %v768_v52 }
 0x30b   :  { %v782_v57 = vshrl.u32 %v1571_v53, 16  ;;  %v790_v58 = vshrl.u32 %v1572_v54, 16  ;;  %v799_v59 = vshrl.u32 %v1573_v55, 16  ;;  %v807_v60 = vshrl.u32 %v1574_v56, 16 }
 0x30c   :  { %v785_v24 = vshll.u32 %v1571_v53, 16  ;;  %v793_v29 = vshll.u32 %v1572_v54, 16  ;;  %v802_v1 = vshll.u32 %v1573_v55, 16  ;;  %v810_v3 = vshll.u32 %v1574_v56, 16 }
 0x30d   :  { %v784_v61 = vrot.slane %v782_v57, 7  ;;  %v792_v62 = vrot.slane %v790_v58, 7  ;;  %v801_v25 = vrot.slane %v799_v59, 7  ;;  %v809_v28 = vrot.slane %v807_v60, 7 }
 0x30f   :  { %v787_v6 = vor.u32 %v785_v24, %v784_v61  ;;  %v788_v7 = vrot.slane %v784_v61, 4  ;;  %v795_v8 = vor.u32 %v793_v29, %v792_v62  ;;  %v797_v9 = vrot.slane %v792_v62, 4 }
 0x310   :  { %v804_v13 = vor.u32 %v802_v1, %v801_v25  ;;  %v805_v16 = vrot.slane %v801_v25, 4  ;;  %v812_v17 = vor.u32 %v810_v3, %v809_v28  ;;  %v814_v18 = vrot.slane %v809_v28, 4 }
 0x311   :  { %v796_v19 = vsel %vm1935_vm8, %v788_v7, %v795_v8  ;;  %v822_v20 = vsel %vm1929_vm7, %v787_v6, %v821_v0  ;;  %v826_v21 = vsel %vm1903_vm2, %v797_v9, %v825_v5  ;;  %v1816_v7 = vld [vmem:[%s2313_s5 + $0x8] sm:$0xff]   ;;  %v1817_v9 = vld [vmem:[%s2313_s5 + $0x10] sm:$0xff]  }
 0x312   :  { %v813_v22 = vsel %vm1935_vm8, %v805_v16, %v812_v17  ;;  %823 = vst [vmem:[#allocation2] sm:$0xf] %v822_v20  ;;  %824 = vst.msk [vmem:[#allocation2 + $0x4] sm:$0xf] %vm123_vm5, %v796_v19  ;;  %v829_v23 = vsel %vm1929_vm7, %v804_v13, %v828_v10  ;;  %v833_v27 = vsel %vm1903_vm2, %v814_v18, %v832_v11  ;;  %v1818_v10 = vld [vmem:[%s2313_s5 + $0x18] sm:$0xff]  }
 0x313   :  { %827 = vst [vmem:[#allocation2 + $0x8] sm:$0x1] %v826_v21  ;;  %830 = vst [vmem:[#allocation2 + $0xc] sm:$0xf] %v829_v23  ;;  %v1821_v21 = vld [vmem:[%s2313_s5 + $0x48] sm:$0xff]   ;;  %v1822_v23 = vld [vmem:[%s2313_s5 + $0x50] sm:$0xff]  }
 0x314   :  { %831 = vst.msk [vmem:[#allocation2 + $0x10] sm:$0xf] %vm123_vm5, %v813_v22  ;;  %834 = vst [vmem:[#allocation2 + $0x14] sm:$0x1] %v833_v27 }
 0x319   :  { %v838_v32 = vld [vmem:[#allocation2] sm:$0xf]  ;;  %v2169_v33 = vld [vmem:[#allocation2 + $0x4] sm:$0xf] }
 0x31a   :  { %v850_v35 = vld [vmem:[#allocation2 + $0x8] sm:$0x1]  ;;  %v853_v31 = vshrl.u32 %v838_v32, 16  ;;  %v856_v36 = vshll.u32 %v838_v32, 16  ;;  %v862_v37 = vshll.u32 %v2169_v33, 16  ;;  %v866_v38 = vshrl.u32 %v2169_v33, 16 }
 0x31b   :  { %v840_v34 = vld [vmem:[#allocation2 + $0xc] sm:$0xf]  ;;  %v872_v30 = vshll.u32 %v850_v35, 16  ;;  %v2173_v41 = vld [vmem:[#allocation2 + $0x10] sm:$0xf]  ;;  %v1537_v8 = vcombine.low %v838_v32, %v2169_v33  ;;  %v1091_v12 = vrot.slane %v2169_v33, 5 }
 0x31c   :  { %v877_v4 = vshrl.u32 %v840_v34, 16  ;;  %v855_v42 = vrot.slane %v853_v31, 4  ;;  %v858_v44 = vrot.slane %v856_v36, 5  ;;  %v864_v45 = vrot.slane %v862_v37, 5  ;;  %v2175_v47 = vld [vmem:[#allocation2 + $0x14] sm:$0x1] }
 0x31d   :  { %v868_v46 = vrot.slane %v866_v38, 4  ;;  %v880_v49 = vshll.u32 %v840_v34, 16  ;;  %v886_v50 = vshll.u32 %v2173_v41, 16  ;;  %v890_v53 = vshrl.u32 %v2173_v41, 16  ;;  %v1083_v11 = vld [vmem:[#allocation2] sm:$0xe] }
 0x31e   :  { %v879_v48 = vrot.slane %v877_v4, 4  ;;  %v859_v51 = vor.u32 %v858_v44, %v855_v42  ;;  %v874_v54 = vrot.slane %v872_v30, 5  ;;  %v896_v60 = vshll.u32 %v2175_v47, 16  ;;  %v1823_v32 = vld [vmem:[%s2313_s5 + $0x58] sm:$0xff]   ;;  %v1084_v33 = vld [vmem:[#allocation2 + $0xc] sm:$0xe] }
 0x31f   :  { %v869_v52 = vor.u32 %v868_v46, %v864_v45  ;;  %v882_v55 = vrot.slane %v880_v49, 5  ;;  %v888_v56 = vrot.slane %v886_v50, 5  ;;  %v892_v59 = vrot.slane %v890_v53, 4  ;;  %v1563_v30 = vld [vmem:[%s2314_s6] ss:$0 sm:$0xff] }
 0x320   :  { %v860_v57 = vrot.slane %v859_v51, 4  ;;  %v898_v28 = vrot.slane %v896_v60, 5  ;;  %v1093_v13 = vrot.slane %v1091_v12, 4  ;;  %v1545_v16 = vrot.slane %v1083_v11, 9 }
 0x321   :  { %v870_v58 = vrot.slane %v869_v52, 4  ;;  %v883_v61 = vor.u32 %v882_v55, %v879_v48  ;;  %v893_v29 = vor.u32 %v892_v59, %v888_v56  ;;  %v1094_v17 = vrot.slane %v850_v35, 5 }
 0x322   :  { %v865_v24 = vsel %vm1977_vm11, %v860_v57, %v864_v45  ;;  %v1538_v19 = vcombine.low %v840_v34, %v2173_v41  ;;  %v1092_v20 = vsel %vm2007_vm15, %v1545_v16, %v1091_v12  ;;  %v1098_v27 = vrot.slane %v2173_v41, 5 }
 0x323   :  { %v875_v62 = vsel %vm1977_vm11, %v870_v58, %v874_v54  ;;  %v884_v25 = vrot.slane %v883_v61, 4  ;;  %v894_v1 = vrot.slane %v893_v29, 4  ;;  %v1095_v18 = vsel %vm2007_vm15, %v1093_v13, %v1094_v17 }
 0x324   :  { %v1529_v0 = vcombine.low %v865_v24, %v875_v62  ;;  %v1555_v22 = vcombine.low %v1092_v20, %v1095_v18  ;;  %v1100_v35 = vrot.slane %v1098_v27, 4  ;;  %v1546_v31 = vrot.slane %v1084_v33, 9 }
 0x325   :  { %v889_v3 = vsel %vm1977_vm11, %v884_v25, %v888_v56  ;;  %v899_v5 = vsel %vm1977_vm11, %v894_v1, %v898_v28  ;;  %v1101_v36 = vrot.slane %v2175_v47, 5 }
 0x326   :  { %1701 = vmatprep.mubr.msk.bf16.mxu1 %vm247_vm12, %v1529_v0  ;;  %v1530_v6 = vcombine.low %v889_v3, %v899_v5  ;;  %v1099_v38 = vsel %vm2007_vm15, %v1546_v31, %v1098_v27 }
 0x327   :  { %v1102_v37 = vsel %vm2007_vm15, %v1100_v35, %v1101_v36 }
 0x328   :  { %1702 = vmatmul.mubr.msk.bf16.vlgmr.msra.gmra.mrb[4].mxu1 %vm247_vm12, %v1530_v6  ;;  %v1556_v34 = vcombine.low %v1099_v38, %v1102_v37 }
 0x329   :  { %1706 = vmatpush3.bf16.msra.mxu1 %v2144_v39  ;;  %1713 = vmatprep.mubr.msk.bf16.mxu1 %vm247_vm12, %v1537_v8  ;;  %v1820_v39 = vld [vmem:[%s2313_s5 + $0x40] sm:$0xff]  }
 0x32a   :  { %1707 = vmatprep.subr.bf16.mxu1 %v1816_v7 }
 0x32d   :  { %1708 = vmatpush3.bf16.msra.mxu1 %v1816_v7 }
 0x32e   :  { %1709 = vmatprep.subr.bf16.mxu1 %v1817_v9 }
 0x331   :  { %1710 = vmatpush3.bf16.msra.mxu1 %v1817_v9 }
 0x332   :  { %1711 = vmatprep.subr.bf16.mxu1 %v1818_v10 }
 0x335   :  { %1712 = vmatpush3.bf16.msra.mxu1 %v1818_v10 }
 0x336   :  { %1717 = vmatprep.subr.bf16.mxu1 %v1820_v39 }
 0x338   :  { %1714 = vmatmul.mubr.msk.bf16.vlgmr.msra.gmra.mrb[4].mxu1 %vm247_vm12, %v1538_v19 }
 0x339   :  { %1718 = vmatpush3.bf16.msra.mxu1 %v1820_v39  ;;  %1725 = vmatprep.mubr.msk.bf16.mxu1 %vm247_vm12, %v1555_v22 }
 0x33a   :  { %1719 = vmatprep.subr.bf16.mxu1 %v1821_v21 }
 0x33d   :  { %1720 = vmatpush3.bf16.msra.mxu1 %v1821_v21 }
 0x33e   :  { %1721 = vmatprep.subr.bf16.mxu1 %v1822_v23 }
 0x341   :  { %1722 = vmatpush3.bf16.msra.mxu1 %v1822_v23 }
 0x342   :  { %1723 = vmatprep.subr.bf16.mxu1 %v1823_v32 }
 0x345   :  { %1724 = vmatpush3.bf16.msra.mxu1 %v1823_v32 }
 0x348   :  { %1726 = vmatmul.mubr.msk.bf16.vlgmr.msra.gmra.mrb[4].mxu1 %vm247_vm12, %v1556_v34 }
 0x41b   :  { %v1727_v41 = vpop.f32.mrb[4].mxu1 }
 0x41c   :  { %v1209_v4 = vadd.f32 %v1727_v41, %v1563_v30  ;;  %v1182_v42 = vpop.f32.mrb[5].mxu1 }
 0x41d   :  { %v1207_v44 = vadd.f32 %v1563_v30, %v1182_v42  ;;  %v1728_v45 = vpop.f32.mrb[6].mxu1 }
 0x41e   :  { %v1217_v46 = vmul.f32 0.005, %v1209_v4  ;;  %v1210_v47 = vadd.f32 %v1728_v45, %v1563_v30  ;;  %v1185_v48 = vpop.f32.mrb[7].mxu1  ;;  %vm1213_vm2 = vcmp.ge.f32.partialorder %v1209_v4, 0.0 }
 0x41f   :  { %vm1211_vm5 = vcmp.ge.f32.partialorder %v1207_v44, 0.0  ;;  %v1215_v49 = vmul.f32 0.005, %v1207_v44  ;;  %v1208_v43 = vadd.f32 %v1563_v30, %v1185_v48  ;;  %v836_v30 = vld [vmem:[%s2315_s7] sm:$0x1] }
 0x420   :  { %v1218_v50 = vmul.f32 0.005, %v1210_v47  ;;  %vm1214_vm7 = vcmp.ge.f32.partialorder %v1210_v47, 0.0  ;;  %v2234_v52 = vsel %vm1213_vm2, %v1209_v4, %v1217_v46 }
 0x421   :  { %v2232_v51 = vsel %vm1211_vm5, %v1207_v44, %v1215_v49  ;;  %vm1212_vm8 = vcmp.ge.f32.partialorder %v1208_v43, 0.0  ;;  %v1216_v53 = vmul.f32 0.005, %v1208_v43  ;;  %v1238_v57 = vmul.f32 %v2234_v52, %v2234_v52 }
 0x422   :  { %v1236_v54 = vmul.f32 %v2232_v51, %v2232_v51  ;;  %v2238_v55 = vsel %vm1214_vm7, %v1210_v47, %v1218_v50  ;;  %v1223_v58 = vsel %vm247_vm12, %v2232_v51, 0.0  ;;  %v1226_v24 = vsel %vm247_vm12, %v2234_v52, 0.0 }
 0x423   :  { %v1220_v56 = vsel %vm1212_vm8, %v1208_v43, %v1216_v53  ;;  %v1239_v29 = vmul.f32 %v2238_v55, %v2238_v55  ;;  %v1243_v28 = vsel %vm247_vm12, %v1238_v57, 0.0  ;;  %v1228_v3 = vsel %vm247_vm12, %v2238_v55, 0.0  ;;  %v1452_v57 = vld [vmem:[%s2307_s0 + $0x8] sm:$0xff] }
 0x424   :  { %v1224_v59 = vsel %vm247_vm12, %v1220_v56, 0.0  ;;  %v1237_v60 = vmul.f32 %v1220_v56, %v1220_v56  ;;  %v1240_v62 = vsel %vm247_vm12, %v1236_v54, 0.0  ;;  %v1451_v54 = vld [vmem:[%s2307_s0] sm:$0xff] }
 0x425   :  { %v1225_v61 = vadd.f32 %v1224_v59, %v1223_v58  ;;  %v1245_v7 = vsel %vm247_vm12, %v1239_v29, 0.0 }
 0x426   :  { %v1241_v0 = vsel %vm247_vm12, %v1237_v60, 0.0 }
 0x427   :  { %v1227_v25 = vadd.f32 %v1226_v24, %v1225_v61  ;;  %v1242_v1 = vadd.f32 %v1241_v0, %v1240_v62 }
 0x429   :  { %v1229_v5 = vadd.f32 %v1228_v3, %v1227_v25  ;;  %v1244_v6 = vadd.f32 %v1243_v28, %v1242_v1 }
 0x42b   :  { %v1230_v8 = vrot.slane %v1229_v5, 4  ;;  %v1246_v9 = vadd.f32 %v1245_v7, %v1244_v6 }
 0x42d   :  { %v1231_v12 = vadd.f32 %v1230_v8, %v1229_v5  ;;  %v1247_v10 = vrot.slane %v1246_v9, 4 }
 0x42f   :  { %v1232_v11 = vrot.slane %v1231_v12, 2  ;;  %v1248_v13 = vadd.f32 %v1247_v10, %v1246_v9 }
 0x431   :  { %v1233_v39 = vadd.f32 %v1232_v11, %v1231_v12  ;;  %v1249_v16 = vrot.slane %v1248_v13, 2 }
 0x433   :  { %v1234_v17 = vrot.slane %v1233_v39, 1  ;;  %v1250_v18 = vadd.f32 %v1249_v16, %v1248_v13 }
 0x435   :  { %v1251_v19 = vrot.slane %v1250_v18, 1  ;;  %v1235_v20 = vadd.f32 %v1234_v17, %v1233_v39 }
 0x437   :  { %v1252_v21 = vadd.f32 %v1251_v19, %v1250_v18 }
 0x439   :  { %v1253_v22 = vsel %vm565_vm9, %v1235_v20, %v1252_v21 }
 0x43a   :  { %1746 = vmatmul.mubr.msk.f32.vlgmr.msra.gmra.mrb[4].mxu0 %vm247_vm12, %v1253_v22 }
 0x43b   :  { %1749 = vmatpush3.msk.msra.mxu0 %vm679_vm10, %v2106_v63  ;;  %1750 = vmatprep.mubr.msk.f32.mxu0 %vm1830_vm0, %v1831_v2  ;;  %v837_v2 = vld [vmem:[%s2316_s8] sm:$0x1] }
 0x50d   :  { %v1323_v23 = vpop.f32.mrb[4].mxu0 }
 0x50e   :  { %v1327_v27 = vmul.f32 0.001953125, %v1323_v23  ;;  %v1747_v32 = vpop.f32.mrb[5].mxu0 }
 0x510   :  { %v1328_v33 = vmul.f32 %v1327_v27, %v1327_v27 }
 0x512   :  { %v1330_v35 = vrot.slane %v1328_v33, 7 }
 0x514   :  { %v1332_v31 = vsub.f32 %v1327_v27, %v1330_v35 }
 0x516   :  { %v1333_v36 = vadd.f32 1e-05, %v1332_v31 }
 0x518   :  { %1826 = vrsqrt.f32 %v1333_v36 }
 0x522   :  { %v1827_v37 = vpop.eup %1826 }
 0x523   :  { %v1342_v38 = vrot.slane %v1827_v37, %v2113_v15 }
 0x525   :  { %v1343_v34 = vcombine.high %v1342_v38, %v1342_v38 }
 0x527   :  { %v1350_v63 = vrot.slane %v1343_v34, %v2113_v15 }
 0x529   :  { %v1352_v41 = vmul.f32 %v1350_v63, %v836_v30 }
 0x52b   :  { %v1353_v4 = vmul.f32 %v1352_v41, %v1327_v27 }
 0x52d   :  { %v1354_v42 = vsub.f32 %v837_v2, %v1353_v4 }
 0x52f   :  { %v1359_v44 = vrot.slane %v1354_v42, %v2124_v26 }
 0x531   :  { %v1361_v45 = vsel %vm565_vm9, %v1352_v41, %v1359_v44 }
 0x532   :  { %1751 = vmatmul.mubr.msk.f32.vlgmr.msra.gmra.mrb[6].mxu0 %vm675_vm13, %v1361_v45 }
 0x605   :  { %v1431_v46 = vpop.f32.mrb[6].mxu0 }
 0x606   :  { %v1438_v47 = vrot.slane %v1431_v46, %v2124_v26  ;;  %v1752_v48 = vpop.f32.mrb[7].mxu0  ;;  %v1446_v15 = vrot.slane %v1431_v46, %v763_v40 }
 0x608   :  { %v1439_v49 = vmul.f32 %v1438_v47, %v2232_v51  ;;  %v1440_v43 = vmul.f32 %v1438_v47, %v1220_v56  ;;  %v1441_v50 = vmul.f32 %v1438_v47, %v2234_v52  ;;  %v1442_v53 = vmul.f32 %v1438_v47, %v2238_v55  ;;  %v1828_v55 = vld [vmem:[%s2307_s0 + $0x18] sm:$0xff] }
 0x60a   :  { %v1447_v26 = vadd.f32 %v1446_v15, %v1439_v49  ;;  %v1448_v40 = vadd.f32 %v1446_v15, %v1440_v43  ;;  %v1449_v51 = vadd.f32 %v1446_v15, %v1441_v50  ;;  %v1450_v56 = vadd.f32 %v1446_v15, %v1442_v53 }
 0x60c   :  { %v1455_v58 = vadd.f32 %v1451_v54, %v1447_v26  ;;  %v1456_v52 = vadd.f32 %v1452_v57, %v1448_v40  ;;  %v1457_v59 = vadd.f32 %v1453_v14, %v1449_v51  ;;  %v1458_v60 = vadd.f32 %v1828_v55, %v1450_v56 }
 0x60e   :  { %1459 = vst.msk [vmem:[%s2317_s11] sm:$0xff] %vm247_vm12, %v1455_v58  ;;  %1460 = vst.msk [vmem:[%s2317_s11 + $0x8] sm:$0xff] %vm247_vm12, %v1456_v52 }
 0x60f   :  { %1461 = vst.msk [vmem:[%s2317_s11 + $0x10] sm:$0xff] %vm247_vm12, %v1457_v59  ;;  %1462 = vst.msk [vmem:[%s2317_s11 + $0x18] sm:$0xff] %vm247_vm12, %v1458_v60 }

</bundles_post_ra>
